<compile_context>
chip_gen: v5e
topology: v5e:2x2
jax: 0.10.0
libtpu: 0.0.40
codegen_flags: <defaults>
</compile_context>

<pallas_src>
import math

import jax
import jax.numpy as jnp
from jax.experimental import pallas as pl
from jax.experimental.pallas import tpu as pltpu

_VMEM = pltpu.MemorySpace.VMEM
_SMEM = pltpu.MemorySpace.SMEM


def _round_up(v: int, m: int) -> int:
    return ((v + m - 1) // m) * m


def make_scaled_inner(inv_scale: float, y2d: jax.Array):
    """Differentiable op: out = (x * y2d).sum() * inv_scale, fwd + bwd as Pallas.

    y2d (random noise) is a closed-over constant: no zero cotangent for it is ever
    written to HBM on the backward path.
    """
    R, K = y2d.shape
    dt = y2d.dtype
    itemsize = jnp.dtype(dt).itemsize

    # Lane-dense tiles sized so 2 operands x 2 pipeline buffers stay well under
    # v7x's 32 MiB scoped VMEM (block <= 2 MiB for f32 at (256, 2048)).
    tile_k = min(_round_up(K, 128), 2048)
    tile_r = min(_round_up(R, 8), 256)
    Kp = _round_up(K, tile_k)
    Rp = _round_up(R, tile_r)
    grid = (Rp // tile_r, Kp // tile_k)

    # Pad once with zeros; padded elements contribute exactly 0 to the inner product.
    y_pad = jnp.pad(y2d, ((0, Rp - R), (0, Kp - K)))

    def _pad(x2d):
        return jnp.pad(x2d, ((0, Rp - R), (0, Kp - K)))

    fwd_cost = pl.CostEstimate(flops=2 * Rp * Kp, transcendentals=0,
                               bytes_accessed=2 * Rp * Kp * itemsize + 4)
    bwd_cost = pl.CostEstimate(flops=Rp * Kp, transcendentals=0,
                               bytes_accessed=2 * Rp * Kp * itemsize + 4)

    # ---------- forward: tiled reduction, f32 accumulator in scratch ----------
    def _fwd_kernel(x_ref, y_ref, o_ref, acc_ref):
        i, j = pl.program_id(0), pl.program_id(1)

        @pl.when((i == 0) & (j == 0))
        def _init():
            acc_ref[...] = jnp.zeros_like(acc_ref)

        # accumulate in f32 regardless of the input dtype
        p = x_ref[...].astype(jnp.float32) * y_ref[...].astype(jnp.float32)
        acc_ref[...] += jnp.sum(p, axis=1, keepdims=True).sum(axis=0, keepdims=True)

        @pl.when((i == pl.num_programs(0) - 1) & (j == pl.num_programs(1) - 1))
        def _done():
            o_ref[...] = acc_ref[...] * inv_scale

    def _fwd_call(x2d):
        return pl.pallas_call(
            _fwd_kernel,
            out_shape=jax.ShapeDtypeStruct((1, 1), jnp.float32),
            grid=grid,
            in_specs=[pl.BlockSpec((tile_r, tile_k), lambda i, j: (i, j)),
                      pl.BlockSpec((tile_r, tile_k), lambda i, j: (i, j))],
            out_specs=pl.BlockSpec((1, 1), lambda i, j: (0, 0)),
            scratch_shapes=[pltpu.VMEM((1, 1), jnp.float32)],
            compiler_params=pltpu.CompilerParams(
                dimension_semantics=("arbitrary", "arbitrary"),
                vmem_limit_bytes=32 * 1024 * 1024),
            cost_estimate=fwd_cost,
        )(_pad(x2d), y_pad)

    # ---------- backward: tiled elementwise  gx = (ct * inv_scale) * y ----------
    def _bwd_kernel(ct_ref, y_ref, gx_ref):
        s = ct_ref[0, 0] * inv_scale          # scalar (SMEM), hoisted out of vector math
        gx_ref[...] = (y_ref[...].astype(jnp.float32) * s).astype(gx_ref.dtype)

    def _bwd_call(ct):
        gx_pad = pl.pallas_call(
            _bwd_kernel,
            out_shape=jax.ShapeDtypeStruct((Rp, Kp), dt),
            grid=grid,
            in_specs=[pl.BlockSpec(memory_space=_SMEM),                 # (1,1) cotangent
                      pl.BlockSpec((tile_r, tile_k), lambda i, j: (i, j))],
            out_specs=pl.BlockSpec((tile_r, tile_k), lambda i, j: (i, j)),
            compiler_params=pltpu.CompilerParams(
                dimension_semantics=("parallel", "parallel"),
                vmem_limit_bytes=32 * 1024 * 1024),
            cost_estimate=bwd_cost,
        )(ct.astype(jnp.float32).reshape(1, 1), y_pad)
        return gx_pad[:R, :K]

    @jax.custom_vjp
    def scaled_inner(x2d):
        return _fwd_call(x2d)

    def _fwd_rule(x2d):
        return _fwd_call(x2d), None

    def _bwd_rule(_, ct):
        return (_bwd_call(ct),)

    scaled_inner.defvjp(_fwd_rule, _bwd_rule)
    return scaled_inner


def path_length_penalty_update(gradients, exp_sum_a, steps, beta: float):
    """norm = sqrt(mean_b(sum_d g^2)), EMA baseline, loss, and state update."""
    A, B, D = gradients.shape
    # lane-dense slab: mean_b(sum_d g^2) == sum over the fused (b,d) lane axis / B
    g2d = gradients.reshape(A, B * D).astype(jnp.float32)
    inv_b = 1.0 / float(B)
    log_beta = float(math.log(beta))

    def kernel(g_ref, esa_ref, steps_ref, loss_ref, nesa_ref, nsteps_ref):
        g = g_ref[...]                                                  # (A, B*D) f32
        norm = jnp.sqrt(jnp.sum(g * g, axis=1, keepdims=True) * inv_b)  # (A, 1)

        ones = jnp.ones((1, 1), jnp.float32)
        esa = esa_ref[0, 0] * ones                                      # SMEM scalar -> (1,1)
        st = steps_ref[0, 0] * ones                                     # (1,1)

        denom = 1.0 - jnp.exp(st * log_beta)                            # 1 - beta**steps
        safe_denom = jnp.where(st > 0.0, denom, ones)
        a_val = esa / safe_denom                                        # (1, 1)

        diff = norm - a_val                                             # (A, 1)
        loss = jnp.mean(diff * diff, axis=0, keepdims=True)             # (1, 1)
        loss = jnp.where(st > 0.0, loss, jnp.zeros_like(loss))

        mean_norm = jnp.mean(norm, axis=0, keepdims=True)               # (1, 1)

        loss_ref[...] = loss
        nesa_ref[...] = beta * esa + (1.0 - beta) * mean_norm
        nsteps_ref[...] = st + 1.0

    return pl.pallas_call(
        kernel,
        out_shape=(jax.ShapeDtypeStruct((1, 1), jnp.float32),
                   jax.ShapeDtypeStruct((1, 1), jnp.float32),
                   jax.ShapeDtypeStruct((1, 1), jnp.float32)),
        in_specs=[pl.BlockSpec(memory_space=_VMEM),
                  pl.BlockSpec(memory_space=_SMEM),
                  pl.BlockSpec(memory_space=_SMEM)],
        out_specs=(pl.BlockSpec(memory_space=_VMEM),
                   pl.BlockSpec(memory_space=_VMEM),
                   pl.BlockSpec(memory_space=_VMEM)),
    )(g2d, exp_sum_a, steps)


class PathLengthPenalty:
    """Functional JAX/Pallas port of the PyTorch PathLengthPenalty module."""

    def __init__(self, beta: float):
        self.beta = float(beta)
        # nn.Parameter(tensor(0.0), requires_grad=False) equivalents (kept (1,1))
        self.steps = jnp.zeros((1, 1), jnp.float32)
        self.exp_sum_a = jnp.zeros((1, 1), jnp.float32)

    def __call__(self, w, gen_fn, key):
        # TODO(synk): torch.autograd.grad walks an external generator graph; in JAX the
        # generator must be an explicit function, so we take gen_fn (w -> x, NCHW) and
        # differentiate with jax.grad; the inner product and its VJP are Pallas kernels.
        x = gen_fn(w)                                    # (N, C, H, W)
        N, C, H, W = x.shape
        inv_scale = 1.0 / math.sqrt(H * W)

        y = jax.random.normal(key, x.shape, dtype=x.dtype)   # torch.randn(x.shape)
        y2d = y.reshape(N * C, H * W)

        # The custom_vjp closes over the per-call noise (so no dense zero cotangent);
        # its jaxpr is identical across calls so XLA's compile cache dedupes the Pallas
        # lowering. Wrap the whole step in jax.jit in production to amortize retracing.
        scaled_inner = make_scaled_inner(inv_scale, y2d)

        def objective(w_):
            x2d = gen_fn(w_).reshape(N * C, H * W)
            return scaled_inner(x2d)[0, 0]

        gradients = jax.grad(objective)(w)               # (n_gen_blocks, batch, d_latent)

        loss, new_esa, new_steps = path_length_penalty_update(
            gradients, self.exp_sum_a, self.steps, self.beta)

        # in-place .mul_/.add_ state updates in torch -> functional updates here
        self.exp_sum_a = new_esa
        self.steps = new_steps
        return loss[0, 0]


if __name__ == "__main__":
    key = jax.random.PRNGKey(0)
    k_w, k_gen, k_y1, k_y2 = jax.random.split(key, 4)

    A, B, D = 4, 2, 32           # w: (n_gen_blocks, batch, d_latent)
    N, C, H, W = 2, 4, 16, 16    # x: NCHW, batch matches B

    w = jax.random.normal(k_w, (A, B, D), jnp.float32)
    # deterministic synthetic "generator" weight linking w -> x (plain-JAX glue)
    gen_weight = jax.random.normal(k_gen, (A, D, C * H * W), jnp.float32) * 0.02

    def gen_fn(w_):
        x_flat = jnp.einsum("and,adf->nf", w_, gen_weight)
        return x_flat.reshape(N, C, H, W)

    plp = PathLengthPenalty(beta=0.99)
    loss0 = plp(w, gen_fn, k_y1)   # steps == 0 branch (loss is 0, state updated)
    loss1 = plp(w, gen_fn, k_y2)   # steps  > 0 branch (EMA baseline used)
    jax.block_until_ready((loss0, loss1, plp.exp_sum_a, plp.steps))
    print("KERNEL_OK")
</pallas_src>

<mosaic_0001>
module attributes {stable_mosaic.version = 11 : i64} {
  func.func @_fwd_kernel(%arg0: i32, %arg1: i32, %arg2: memref<8x256xf32, #tpu.memory_space<vmem>>, %arg3: memref<8x256xf32, #tpu.memory_space<vmem>>, %arg4: memref<1x1xf32, #tpu.memory_space<vmem>>, %arg5: memref<1x1xf32, #tpu.memory_space<vmem>>) attributes {dimension_semantics = [#tpu.dimension_semantics<arbitrary>, #tpu.dimension_semantics<arbitrary>], iteration_bounds = array<i64: 1, 1>, scalar_prefetch = 0 : i64, scratch_operands = 1 : i64, tpu.core_type = #tpu.core_type<tc>, window_params = [{transform_indices = @transform_0, window_bounds = array<i64: 8, 256>}, {transform_indices = @transform_1, window_bounds = array<i64: 8, 256>}, {pipeline_mode = #tpu.pipeline_mode<synchronous>, transform_indices = @transform_2, window_bounds = array<i64: 1, 1>}]} {
    %c0_i32 = arith.constant 0 : i32
    %0 = arith.cmpi eq, %arg0, %c0_i32 : i32
    %c0_i32_0 = arith.constant 0 : i32
    %1 = arith.cmpi eq, %arg1, %c0_i32_0 : i32
    %2 = arith.andi %0, %1 : i1
    %3 = arith.extui %2 : i1 to i32
    %c0_i32_1 = arith.constant 0 : i32
    %4 = arith.cmpi ne, %3, %c0_i32_1 : i32
    scf.if %4 {
      %cst_13 = arith.constant 0.000000e+00 : f32
      %20 = vector.broadcast %cst_13 : f32 to vector<1x1xf32>
      %c0_14 = arith.constant 0 : index
      %c0_15 = arith.constant 0 : index
      %21 = vector.load %arg5[%c0_14, %c0_15] : memref<1x1xf32, #tpu.memory_space<vmem>>, vector<1x1xf32>
      tpu.vector_store %arg5[%c0_14, %c0_15], %20 {strides = array<i32>} : memref<1x1xf32, #tpu.memory_space<vmem>>, vector<1x1xf32>,
    } else {
    }
    %c0 = arith.constant 0 : index
    %c0_2 = arith.constant 0 : index
    %5 = vector.load %arg2[%c0, %c0_2] : memref<8x256xf32, #tpu.memory_space<vmem>>, vector<8x256xf32>
    %c0_3 = arith.constant 0 : index
    %c0_4 = arith.constant 0 : index
    %6 = vector.load %arg3[%c0_3, %c0_4] : memref<8x256xf32, #tpu.memory_space<vmem>>, vector<8x256xf32>
    %7 = arith.mulf %5, %6 : vector<8x256xf32>
    %c0_5 = arith.constant 0 : index
    %c0_6 = arith.constant 0 : index
    %8 = vector.load %arg5[%c0_5, %c0_6] : memref<1x1xf32, #tpu.memory_space<vmem>>, vector<1x1xf32>
    %cst = arith.constant dense<0.000000e+00> : vector<8xf32>
    %9 = vector.multi_reduction <add>, %7, %cst [1] : vector<8x256xf32> to vector<8xf32>
    %10 = vector.shape_cast %9 : vector<8xf32> to vector<8x1xf32>
    %cst_7 = arith.constant dense<0.000000e+00> : vector<1xf32>
    %11 = vector.multi_reduction <add>, %10, %cst_7 [0] : vector<8x1xf32> to vector<1xf32>
    %12 = vector.shape_cast %11 : vector<1xf32> to vector<1x1xf32>
    %13 = arith.addf %8, %12 : vector<1x1xf32>
    %c0_8 = arith.constant 0 : index
    %c0_9 = arith.constant 0 : index
    %14 = vector.load %arg5[%c0_8, %c0_9] : memref<1x1xf32, #tpu.memory_space<vmem>>, vector<1x1xf32>
    tpu.vector_store %arg5[%c0_8, %c0_9], %13 {strides = array<i32>} : memref<1x1xf32, #tpu.memory_space<vmem>>, vector<1x1xf32>,
    %c0_i32_10 = arith.constant 0 : i32
    %15 = arith.cmpi eq, %arg0, %c0_i32_10 : i32
    %c0_i32_11 = arith.constant 0 : i32
    %16 = arith.cmpi eq, %arg1, %c0_i32_11 : i32
    %17 = arith.andi %15, %16 : i1
    %18 = arith.extui %17 : i1 to i32
    %c0_i32_12 = arith.constant 0 : i32
    %19 = arith.cmpi ne, %18, %c0_i32_12 : i32
    scf.if %19 {
      %c0_13 = arith.constant 0 : index
      %c0_14 = arith.constant 0 : index
      %20 = vector.load %arg5[%c0_13, %c0_14] : memref<1x1xf32, #tpu.memory_space<vmem>>, vector<1x1xf32>
      %cst_15 = arith.constant 6.250000e-02 : f32
      %21 = vector.broadcast %cst_15 : f32 to vector<1x1xf32>
      %22 = arith.mulf %20, %21 : vector<1x1xf32>
      %c0_16 = arith.constant 0 : index
      %c0_17 = arith.constant 0 : index
      %23 = vector.load %arg4[%c0_16, %c0_17] : memref<1x1xf32, #tpu.memory_space<vmem>>, vector<1x1xf32>
      tpu.vector_store %arg4[%c0_16, %c0_17], %22 {strides = array<i32>} : memref<1x1xf32, #tpu.memory_space<vmem>>, vector<1x1xf32>,
    } else {
    }
    return
  }
  func.func @transform_0(%arg0: i32, %arg1: i32) -> (i32, i32) {
    %c0_i32 = arith.constant 0 : i32
    return %arg0, %arg1 : i32, i32
  }
  func.func @transform_1(%arg0: i32, %arg1: i32) -> (i32, i32) {
    %c0_i32 = arith.constant 0 : i32
    return %arg0, %arg1 : i32, i32
  }
  func.func @transform_2(%arg0: i32, %arg1: i32) -> (i32, i32) {
    %c0_i32 = arith.constant 0 : i32
    %c0_i32_0 = arith.constant 0 : i32
    %c0_i32_1 = arith.constant 0 : i32
    return %c0_i32, %c0_i32_0 : i32, i32
  }
}

</mosaic_0001>

<bundles_post_ra>
// kernel: tpu_custom_call.1
= control target key start
LH: loop header
LB: loop body
LE: loop exit
PB: predicated region body
PF: predicated region fallthrough
CT: control target
= control target key end

     0   :  { %7 = vsyncpa [#allocation4], 0  ;;  %s203_s0 = inlined_call_operand.hbm [shape: f32[8,256], index: 0, kind: input, shape index: {}]   ;;  %s204_s1 = inlined_call_operand.hbm [shape: f32[8,256], index: 1, kind: input, shape index: {}]   ;;  %s205_s2 = inlined_call_operand.hbm [shape: f32[1,1], index: 2, kind: output, shape index: {}]  }
   0x1   :  { %8 = vsyncpa [#allocation7], 0 }
   0x2   :  { %9 = vsyncpa [#allocation5], 0  ;;  %s15_s11 = sshll.u32 %s203_s0, 4  ;;  %s172_s12 = smov [#allocation3]   ;;  %s16_s11 = int_to_ptr.hbm [resolvable:$true] %s15_s11 }
   0x3   :  { %s17_s13 = sshll.u32 %s172_s12, 4  ;;  %s26_s16 = sshll.u32 %s204_s1, 4  ;;  %s18_s13 = int_to_ptr.vmem [resolvable:$true] %s17_s13  ;;  %s27_s16 = int_to_ptr.hbm [resolvable:$true] %s26_s16 }
   0x4   :  { %20 = dma.hbm_to_vmem [thread:$0]  %s16_s11, 256, %s18_s13, [#allocation4]  }
   0x5   :  { %s173_s17 = smov [#allocation6]  }
   0x6   :  { %s28_s18 = sshll.u32 %s173_s17, 4  ;;  %s29_s18 = int_to_ptr.vmem [resolvable:$true] %s28_s18 }
   0x7   :  { %31 = dma.hbm_to_vmem [thread:$0]  %s27_s16, 256, %s29_s18, [#allocation7]  }
   0x8   :  { %166 = dma.done.wait [#allocation4], 256  }
   0x9   :  { %167 = vsyncadd [#allocation4], 4294967040 }
   0xa   :  { %168 = dma.done.wait [#allocation7], 256  }
   0xb   :  { %169 = vsyncadd [#allocation7], 4294967040  ;;  %v48_v0 = vld [vmem:[#allocation3] sm:$0xff]  ;;  %v49_v1 = vld [vmem:[#allocation3 + $0x8] sm:$0xff]  ;;  %vm46_vm0 = vcmask 0   ;;  %v174_v7 = vmov 0.0  }
   0xc   :  { %v50_v2 = vld [vmem:[#allocation6] sm:$0xff]  ;;  %v51_v3 = vld [vmem:[#allocation6 + $0x8] sm:$0xff]  ;;  %47 = vst.msk [vmem:[#allocation2] sm:$0x1] %vm46_vm0, %v174_v7  ;;  %s175_s0 = smov [#allocation8]   ;;  %s79_s21 = sshll.u32 %s205_s2, 4  ;;  %s80_s21 = int_to_ptr.hbm [resolvable:$true] %s79_s21 }
   0xd   :  { %v52_v4 = vmul.f32 %v50_v2, %v48_v0  ;;  %v53_v5 = vmul.f32 %v51_v3, %v49_v1  ;;  %s77_s1 = sshll.u32 %s175_s0, 4  ;;  %s78_s1 = int_to_ptr.vmem [resolvable:$true] %s77_s1 }
   0xf   :  { %v55_v6 = vadd.f32 %v53_v5, %v52_v4 }
  0x11   :  { %56 = vadd.xlane.f32.xlu0 %v55_v6 }
  0x13   :  { %v54_v14 = vld [vmem:[#allocation2] sm:$0x1] }
  0x84   :  { %v57_v8 = vpop.xlane.xlu0 %56 }
  0x85   :  { %v58_v9 = vrot.slane %v57_v8, 4 }
  0x87   :  { %v59_v10 = vadd.f32 %v58_v9, %v57_v8 }
  0x89   :  { %v60_v11 = vrot.slane %v59_v10, 2 }
  0x8b   :  { %v61_v12 = vadd.f32 %v60_v11, %v59_v10 }
  0x8d   :  { %v62_v13 = vrot.slane %v61_v12, 1 }
  0x8f   :  { %v63_v15 = vadd.f32 %v62_v13, %v61_v12 }
  0x91   :  { %v64_v16 = vadd.f32 %v63_v15, %v54_v14 }
  0x93   :  { %66 = vst.msk [vmem:[#allocation2] sm:$0x1] %vm46_vm0, %v64_v16 }
  0x9a   :  { %v69_v17 = vld [vmem:[#allocation2] sm:$0x1] }
  0x9b   :  { %v70_v18 = vmul.f32 0.0625, %v69_v17 }
  0x9d   :  { %71 = vst.msk [vmem:[#allocation8] sm:$0x1] %vm46_vm0, %v70_v18 }
  0x9e   :  { %82 = dma.vmem_to_hbm [thread:$0]  %s78_s1, 16, %s80_s21, [#allocation5]  }
  0x9f   :  { %170 = dma.done.wait [#allocation5], 16  }
  0xa0   :  { %171 = vsyncadd [#allocation5], 4294967280 }
  0xa1   :  { %87 = vsyncpa [#allocation4], 1 }
  0xa2   :  { %88 = vsyncpa [#allocation7], 1 }
  0xa3   :  { %89 = vsyncpa [#allocation5], 1 }

</bundles_post_ra>
